<compile_context>
chip_gen: v5e
topology: v5e:2x2
jax: 0.10.0
libtpu: 0.0.40
codegen_flags: <defaults>
</compile_context>

<pallas_src>
import math

import jax
import jax.numpy as jnp
from jax.experimental import pallas as pl
from jax.experimental.pallas import tpu as pltpu


# --------------------------------------------------------------------------- #
# Kernel
# --------------------------------------------------------------------------- #
def _projector_kernel(x_ref, wt_ref, b_ref, o_ref):
    # x_ref: (B, C) f32   wt_ref: (C, TN) bf16/f32   b_ref: (1, N_pad) resident
    # o_ref: (B, TN) f32
    tn = o_ref.shape[-1]
    off = pl.multiple_of(pl.program_id(0) * tn, 128)   # bias slice start (lane-aligned)
    # Up-cast the weight tile to f32 on the VPU (free: kernel is HBM-bound) so
    # the MXU accumulates in full f32 — exact parity with the PyTorch module
    # modulo bf16 weight storage.
    y = jnp.dot(x_ref[...], wt_ref[...].astype(jnp.float32),
                preferred_element_type=jnp.float32)
    o_ref[...] = (y + b_ref[:, pl.ds(off, tn)]).astype(o_ref.dtype)


# --------------------------------------------------------------------------- #
# Tiling / VMEM helpers
# --------------------------------------------------------------------------- #
def _round_up(x, m):
    return ((x + m - 1) // m) * m


def _vmem_capacity_bytes():
    """Best-effort per-core VMEM capacity; conservative default = 64 MiB (v7x)."""
    try:
        info = pltpu.get_tpu_info()
        cap = getattr(info, "vmem_capacity_bytes", None)
        if cap:
            return int(cap)
    except Exception:
        pass
    return 64 * 1024 * 1024


def _choose_tile_n(n_pad, context_size, wbytes, budget_bytes):
    """Widest lane-dense tile (multiple of 128) dividing n_pad whose
    double-buffered weight tile fits the budget."""
    for tn in (8192, 4096, 2048, 1024, 512, 256, 128):
        if n_pad % tn == 0 and 2 * tn * context_size * wbytes <= budget_bytes:
            return tn
    return 128  # n_pad is always a multiple of 128, so this is always valid


# --------------------------------------------------------------------------- #
# Wrapper
# --------------------------------------------------------------------------- #
def _linear_rowmajor(x2, wt, bias, *, tile_n=None):
    """y = x2 @ wt + bias, computed in f32.

    x2:   (B, C) f32
    wt:   (C, N) pre-transposed weight (bf16 or f32)
    bias: (N,) f32 or None
    returns (B, N) f32
    """
    B, C = x2.shape
    C2, N = wt.shape
    assert C2 == C

    wbytes = jnp.dtype(wt.dtype).itemsize
    n_pad = _round_up(N, 128)

    # Generation-aware budget for the double-buffered weight tile.
    cap = _vmem_capacity_bytes()
    budget = (48 << 20) if cap >= (96 << 20) else (36 << 20)

    tn = tile_n if tile_n is not None else _choose_tile_n(n_pad, C, wbytes, budget)
    assert n_pad % tn == 0 and tn % 128 == 0

    if n_pad != N:
        # TODO(synk): pre-pad the stored weight/bias at init to avoid this per-call pad.
        wt = jnp.pad(wt, ((0, 0), (0, n_pad - N)))
    b = bias if bias is not None else jnp.zeros((N,), jnp.float32)
    b2 = jnp.pad(b.astype(jnp.float32), (0, n_pad - N)).reshape(1, n_pad)

    grid = (n_pad // tn,)

    # Explicit VMEM limit: 2x weight tile + x/out double buffers + resident bias + margin.
    need = (2 * tn * C * wbytes) + 2 * (B * C * 4) + 2 * (B * tn * 4) + 2 * (n_pad * 4)
    vmem_limit = min(int(cap * 0.75), max(32 << 20, need + (8 << 20)))

    flops = 2 * B * C * n_pad
    bytes_accessed = wbytes * C * n_pad + 4 * B * C + 4 * n_pad + 4 * B * n_pad

    y = pl.pallas_call(
        _projector_kernel,
        out_shape=jax.ShapeDtypeStruct((B, n_pad), jnp.float32),
        grid_spec=pltpu.PrefetchScalarGridSpec(
            num_scalar_prefetch=0,
            grid=grid,
            in_specs=[
                pl.BlockSpec((B, C), lambda j: (0, 0)),      # x: resident across N tiles
                pl.BlockSpec((C, tn), lambda j: (0, j)),     # weight tile (the only real stream)
                pl.BlockSpec((1, n_pad), lambda j: (0, 0)),  # bias: resident, sliced in-kernel
            ],
            out_specs=pl.BlockSpec((B, tn), lambda j: (0, j)),
        ),
        compiler_params=pltpu.CompilerParams(
            dimension_semantics=("parallel",),   # megacore-shard N tiles on v7x
            vmem_limit_bytes=vmem_limit,
        ),
        cost_estimate=pl.CostEstimate(
            flops=flops, transcendentals=0, bytes_accessed=bytes_accessed),
    )(x2, wt, b2)

    return y[:, :N] if n_pad != N else y


def projector_forward(x, weight_t, bias, block_in, block_out, *, tile_n=None):
    """Forward pass of Projector.

    x:        (context_size,) f32 — single context vector (module semantics).
    weight_t: (context_size, block_in*block_out) — PyTorch nn.Linear weight
              stored PRE-TRANSPOSED at init (bf16 recommended).
    bias:     (block_in*block_out,) f32 or None.
    returns   (block_out, block_in) f32.
    """
    context_size = x.shape[0]
    n_out = block_in * block_out
    assert weight_t.shape == (context_size, n_out)

    x2 = x.reshape(1, context_size).astype(jnp.float32)
    y = _linear_rowmajor(x2, weight_t, bias, tile_n=tile_n)   # (1, n_out)
    # PyTorch: .view(block_out, block_in) — row-major reshape of the flat output.
    return y[0].reshape(block_out, block_in)


# --------------------------------------------------------------------------- #
# Self-test
# --------------------------------------------------------------------------- #
if __name__ == "__main__":
    context_size = 32
    block_in = 16
    block_out = 8
    n_out = block_in * block_out  # 128

    key = jax.random.PRNGKey(0)
    k_w, k_x = jax.random.split(key)

    # Projector.reset_parameters(): weight ~ N(0, 1/sqrt(context_size)), bias = 0.
    # The weight is created directly in the production layout: (C, N), bf16.
    std = 1.0 / math.sqrt(context_size)
    weight_t = (std * jax.random.normal(
        k_w, (context_size, n_out), dtype=jnp.float32)).astype(jnp.bfloat16)
    bias = jnp.zeros((n_out,), dtype=jnp.float32)

    x = jax.random.normal(k_x, (context_size,), dtype=jnp.float32)

    out = projector_forward(x, weight_t, bias, block_in, block_out)
    out = jax.block_until_ready(out)

    # Reference: same bf16-stored weight, f32 compute (matches kernel math).
    ref = (x @ weight_t.astype(jnp.float32) + bias).reshape(block_out, block_in)
    assert out.shape == (block_out, block_in)
    assert jnp.allclose(out, ref, atol=1e-4, rtol=1e-4)

    print("KERNEL_OK")
</pallas_src>

<mosaic_0001>
module attributes {stable_mosaic.version = 11 : i64} {
  func.func @_projector_kernel(%arg0: i32, %arg1: memref<1x32xf32, #tpu.memory_space<vmem>>, %arg2: memref<32x128xbf16, #tpu.memory_space<vmem>>, %arg3: memref<1x128xf32, #tpu.memory_space<vmem>>, %arg4: memref<1x128xf32, #tpu.memory_space<vmem>>) attributes {dimension_semantics = [#tpu.dimension_semantics<parallel>], iteration_bounds = array<i64: 1>, scalar_prefetch = 0 : i64, scratch_operands = 0 : i64, tpu.core_type = #tpu.core_type<tc>, window_params = [{pipeline_mode = #tpu.pipeline_mode<synchronous>, transform_indices = @transform_0, window_bounds = array<i64: 1, 32>}, {transform_indices = @transform_1, window_bounds = array<i64: 32, 128>}, {pipeline_mode = #tpu.pipeline_mode<synchronous>, transform_indices = @transform_2, window_bounds = array<i64: 1, 128>}, {transform_indices = @transform_3, window_bounds = array<i64: 1, 128>}]} {
    %c128_i32 = arith.constant 128 : i32
    %0 = arith.muli %arg0, %c128_i32 : i32
    %1 = tpu.assume_multiple %0, 128 : i32
    %c0 = arith.constant 0 : index
    %c0_0 = arith.constant 0 : index
    %2 = vector.load %arg1[%c0, %c0_0] : memref<1x32xf32, #tpu.memory_space<vmem>>, vector<1x32xf32>
    %c0_1 = arith.constant 0 : index
    %c0_2 = arith.constant 0 : index
    %3 = vector.load %arg2[%c0_1, %c0_2] : memref<32x128xbf16, #tpu.memory_space<vmem>>, vector<32x128xbf16>
    %4 = arith.extf %3 : vector<32x128xbf16> to vector<32x128xf32>
    %cst = arith.constant dense<0.000000e+00> : vector<1x128xf32>
    %5 = tpu.matmul %2, %4, %cst {dimension_numbers = #tpu.dot_dimension_numbers<[1], [0], [0], [1], [0, 0, 1, 1], [], []>} : vector<1x32xf32>, vector<32x128xf32>, vector<1x128xf32> -> vector<1x128xf32>
    %c0_3 = arith.constant 0 : index
    %6 = arith.index_cast %1 : i32 to index
    %7 = vector.load %arg3[%c0_3, %6] : memref<1x128xf32, #tpu.memory_space<vmem>>, vector<1x128xf32>
    %8 = arith.addf %5, %7 : vector<1x128xf32>
    %c0_4 = arith.constant 0 : index
    %c0_5 = arith.constant 0 : index
    %9 = vector.load %arg4[%c0_4, %c0_5] : memref<1x128xf32, #tpu.memory_space<vmem>>, vector<1x128xf32>
    tpu.vector_store %arg4[%c0_4, %c0_5], %8 {strides = array<i32>} : memref<1x128xf32, #tpu.memory_space<vmem>>, vector<1x128xf32>,
    return
  }
  func.func @transform_0(%arg0: i32) -> (i32, i32) {
    %c0_i32 = arith.constant 0 : i32
    %c0_i32_0 = arith.constant 0 : i32
    %c0_i32_1 = arith.constant 0 : i32
    return %c0_i32, %c0_i32_0 : i32, i32
  }
  func.func @transform_1(%arg0: i32) -> (i32, i32) {
    %c0_i32 = arith.constant 0 : i32
    %c0_i32_0 = arith.constant 0 : i32
    return %c0_i32, %arg0 : i32, i32
  }
  func.func @transform_2(%arg0: i32) -> (i32, i32) {
    %c0_i32 = arith.constant 0 : i32
    %c0_i32_0 = arith.constant 0 : i32
    %c0_i32_1 = arith.constant 0 : i32
    return %c0_i32, %c0_i32_0 : i32, i32
  }
  func.func @transform_3(%arg0: i32) -> (i32, i32) {
    %c0_i32 = arith.constant 0 : i32
    %c0_i32_0 = arith.constant 0 : i32
    return %c0_i32, %arg0 : i32, i32
  }
}

</mosaic_0001>

<bundles_post_ra>
// kernel: tpu_custom_call.1
= control target key start
LH: loop header
LB: loop body
LE: loop exit
PB: predicated region body
PF: predicated region fallthrough
CT: control target
= control target key end

     0   :  { %8 = vsyncpa [#allocation3], 0  ;;  %s233_s0 = inlined_call_operand.hbm [shape: f32[1,32], index: 0, kind: input, shape index: {}]   ;;  %s234_s1 = inlined_call_operand.hbm [shape: bf16[32,128], index: 1, kind: input, shape index: {}]   ;;  %s235_s2 = inlined_call_operand.vmem [shape: f32[1,128], index: 2, kind: input, shape index: {}]   ;;  %s236_s3 = inlined_call_operand.hbm [shape: f32[1,128], index: 3, kind: output, shape index: {}]  }
   0x1   :  { %9 = vsyncpa [#allocation6], 0 }
   0x2   :  { %10 = vsyncpa [#allocation4], 0  ;;  %s16_s14 = sshll.u32 %s233_s0, 4  ;;  %s196_s15 = smov [#allocation2]   ;;  %s17_s14 = int_to_ptr.hbm [resolvable:$true] %s16_s14 }
   0x3   :  { %s18_s16 = sshll.u32 %s196_s15, 4  ;;  %s26_s19 = sshll.u32 %s234_s1, 4  ;;  %s19_s16 = int_to_ptr.vmem [resolvable:$true] %s18_s16  ;;  %s27_s19 = int_to_ptr.hbm [resolvable:$true] %s26_s19 }
   0x4   :  { %21 = dma.hbm_to_vmem [thread:$0]  %s17_s14, 16, %s19_s16, [#allocation3]  }
   0x5   :  { %s197_s20 = smov [#allocation5]   ;;  %s198_s22 = smov 64  }
   0x6   :  { %s28_s21 = sshll.u32 %s197_s20, 4  ;;  %s199_s23 = smov 4   ;;  %s29_s21 = int_to_ptr.vmem [resolvable:$true] %s28_s21 }
   0x7   :  { %34 = dma.hbm_to_vmem [thread:$0]  %s27_s19, 256, %s29_s21, [#allocation6], %s198_s22, %s198_s22, %s199_s23  }
   0x8   :  { %190 = dma.done.wait [#allocation3], 16  }
   0x9   :  { %191 = vsyncadd [#allocation3], 4294967280 }
   0xa   :  { %192 = dma.done.wait [#allocation6], 256  }
   0xb   :  { %193 = vsyncadd [#allocation6], 4294967040  ;;  %v112_v0 = vld [vmem:[#allocation5 + $0x8] sm:$0xff]   ;;  %v105_v1 = vld [vmem:[#allocation5] sm:$0xff]   ;;  %vm59_vm0 = vcmask 261120   ;;  %s200_s24 = smov [#allocation7]  }
   0xc   :  { %v111_v2 = vunpack.c.h.bf16 %v112_v0  ;;  %v110_v3 = vunpack.c.l.bf16 %v112_v0  ;;  %v107_v4 = vunpack.c.h.bf16 %v105_v1  ;;  %v106_v5 = vunpack.c.l.bf16 %v105_v1  ;;  %v46_v6 = vld [vmem:[#allocation2] sm:$0x1]  ;;  %s89_s25 = sshll.u32 %s200_s24, 4  ;;  %s91_s28 = sshll.u32 %s236_s3, 4  ;;  %s90_s25 = int_to_ptr.vmem [resolvable:$true] %s89_s25  ;;  %s92_s28 = int_to_ptr.hbm [resolvable:$true] %s91_s28 }
   0xd   :  { %v58_v7 = vld [vmem:[%s235_s2] sm:$0x1] }
   0xe   :  { %75 = vmatpush.msra.mxu0 %v111_v2 }
  0x10   :  { %76 = vmatpush.msra.mxu0 %v110_v3 }
  0x12   :  { %77 = vmatpush.msra.mxu0 %v107_v4 }
  0x14   :  { %78 = vmatpush.msra.mxu0 %v106_v5 }
  0x15   :  { %103 = vmatmul.msk.f32.vlgmr.msra.gmra.mxu0 %vm59_vm0, %v46_v6 }
  0x92   :  { %v80_v8 = vpop.f32.mrf.mxu0 }
  0x93   :  { %v81_v9 = vadd.f32 %v80_v8, %v58_v7 }
  0x95   :  { %83 = vst [vmem:[#allocation7] sm:$0x1] %v81_v9 }
  0x96   :  { %94 = dma.vmem_to_hbm [thread:$0]  %s90_s25, 16, %s92_s28, [#allocation4]  }
  0x97   :  { %194 = dma.done.wait [#allocation4], 16  }
  0x98   :  { %195 = vsyncadd [#allocation4], 4294967280 }
  0x99   :  { %99 = vsyncpa [#allocation3], 1 }
  0x9a   :  { %100 = vsyncpa [#allocation6], 1 }
  0x9b   :  { %101 = vsyncpa [#allocation4], 1 }

</bundles_post_ra>
